<compile_context>
chip_gen: v5e
topology: v5e:2x2
jax: 0.10.0
libtpu: 0.0.40
codegen_flags: <defaults>
</compile_context>

<pallas_src>
import functools

import jax
import jax.numpy as jnp
from jax.experimental import pallas as pl
from jax.experimental.pallas import tpu as pltpu

LANE = 128
SUBLANE = 8


def _round_up(x: int, m: int) -> int:
    return ((x + m - 1) // m) * m


def _default_num_parallel() -> int:
    """2 parallel slices on dual-TensorCore chips (v7x), 1 elsewhere."""
    try:
        kind = jax.devices()[0].device_kind.lower()
    except Exception:  # pragma: no cover - defensive, e.g. no devices at trace time
        return 1
    return 2 if ("v7" in kind or "7x" in kind) else 1


def _kl_partial_kernel(t_ref, p_ref, o_ref, *, steps, tile, fold, data_rows,
                       needs_mask):
    pi = pl.program_id(0)
    i = pl.program_id(1)

    # o_ref's block index depends only on the parallel axis -> it stays resident in
    # VMEM across the whole reduction loop and acts as the accumulator.
    @pl.when(i == 0)
    def _():
        o_ref[...] = jnp.zeros_like(o_ref)

    t = t_ref[...].astype(jnp.float32)
    p = p_ref[...].astype(jnp.float32)

    # KL contribution with a single transcendental: t * log(t / p); 0*log(0) := 0.
    # maximum() keeps the discarded branch free of -inf / NaN (debug_nans friendly).
    tiny = jnp.float32(1e-38)
    log_ratio = jnp.log(jnp.maximum(t, tiny) / jnp.maximum(p, tiny))
    keep = t > 0.0

    if needs_mask:
        # Mask (a) garbage rows of a ragged last block and (b) fully out-of-range
        # (clamped) blocks of the last parallel slice.  Uses the UNCLAMPED global
        # block index so duplicate clamped blocks contribute exactly zero.
        row_start = (pi * steps + i) * tile
        row_idx = row_start + jax.lax.broadcasted_iota(jnp.int32, (tile, LANE), 0)
        keep = jnp.logical_and(keep, row_idx < data_rows)

    contrib = jnp.where(keep, t * log_ratio, 0.0)

    # Fold (tile,128) -> (tile/(8*fold), fold, 8, 128) and reduce only the leading
    # axis: `fold` independent VPU add chains feeding the resident accumulator.
    folded = jnp.sum(
        contrib.reshape(tile // (SUBLANE * fold), fold, SUBLANE, LANE), axis=0
    )
    o_ref[...] += folded.reshape(o_ref.shape)


@functools.partial(jax.jit, static_argnames=("row_tile", "num_parallel"))
def kl_divergence_loss_pallas(
    targets: jax.Array,
    preds: jax.Array,
    *,
    row_tile: int = 4096,
    num_parallel: int | None = None,
) -> jax.Array:
    """sum(targets * log(targets / preds)) computed in a Pallas TPU kernel."""
    assert targets.shape == preds.shape, "targets/preds must have the same shape"
    n_elem = targets.size

    t_flat = targets.reshape(-1)
    p_flat = preds.reshape(-1)

    num_p = _default_num_parallel() if num_parallel is None else max(1, int(num_parallel))

    # --- layout (pure glue) -----------------------------------------------------------
    # Minimal padding: only to the next 8x128 (=1024 element) boundary so the data is a
    # clean lane-dense (rows, 128) slab; skipped entirely when already aligned.
    data_rows = _round_up(pl.cdiv(n_elem, LANE), SUBLANE)
    pad = data_rows * LANE - n_elem
    if pad:
        # Padded elements contribute exactly 0 KL: targets=0 (0*log0 := 0), preds=1.
        t_flat = jnp.pad(t_flat, (0, pad), constant_values=0)
        p_flat = jnp.pad(p_flat, (0, pad), constant_values=1)
    t2 = t_flat.reshape(data_rows, LANE)
    p2 = p_flat.reshape(data_rows, LANE)

    # Row tile: large (default 4096 rows = 2 MiB/input/step for f32) to amortize the
    # ~0.35us per-grid-step pipeline overhead; always a multiple of 8, capped at data.
    tile = min(_round_up(row_tile, SUBLANE), data_rows)
    chunks = tile // SUBLANE
    fold = 4 if chunks % 4 == 0 else (2 if chunks % 2 == 0 else 1)

    total_blocks = pl.cdiv(data_rows, tile)
    num_p = min(num_p, total_blocks)
    steps = pl.cdiv(total_blocks, num_p)
    grid = (num_p, steps)

    # The ragged tail (partial last block / over-allocated slices) is masked in-kernel;
    # skip the mask math entirely when the grid exactly tiles the data.
    needs_mask = (num_p * steps * tile) != data_rows
    clamp_blocks = (num_p * steps) > total_blocks

    def in_index_map(pi, i):
        gb = pi * steps + i
        if clamp_blocks:
            gb = jnp.minimum(gb, total_blocks - 1)  # clamped dup blocks are masked out
        return (gb, 0)

    itemsize = jnp.dtype(targets.dtype).itemsize
    cost = pl.CostEstimate(
        flops=6 * n_elem,
        transcendentals=2 * n_elem,  # one log + one divide per element
        bytes_accessed=2 * n_elem * itemsize + num_p * fold * SUBLANE * LANE * 4,
    )

    kernel = functools.partial(
        _kl_partial_kernel,
        steps=steps, tile=tile, fold=fold, data_rows=data_rows, needs_mask=needs_mask,
    )

    partials = pl.pallas_call(
        kernel,
        out_shape=jax.ShapeDtypeStruct((num_p, fold * SUBLANE, LANE), jnp.float32),
        grid_spec=pltpu.PrefetchScalarGridSpec(
            num_scalar_prefetch=0,
            grid=grid,
            in_specs=[
                pl.BlockSpec((tile, LANE), in_index_map),
                pl.BlockSpec((tile, LANE), in_index_map),
            ],
            out_specs=pl.BlockSpec((1, fold * SUBLANE, LANE), lambda pi, i: (pi, 0, 0)),
        ),
        compiler_params=pltpu.CompilerParams(
            dimension_semantics=("parallel", "arbitrary"),
            vmem_limit_bytes=32 * 1024 * 1024,
        ),
        cost_estimate=cost,
    )(t2, p2)

    # Final reduce of the tiny (P, fold*8, 128) partial slab: glue.
    return jnp.sum(partials).astype(jnp.float32)


class Loss:
    """JAX/Pallas port of utils/criterion.py::Loss."""

    def __init__(self, loss_fn=None):
        self.loss_fn = loss_fn

    def __call__(self, targets: jax.Array, preds: jax.Array) -> jax.Array:
        return self.loss_fn(targets, preds)


class KLLoss(Loss):
    """JAX/Pallas port of utils/criterion.py::KLLoss.

    The PyTorch version detaches, round-trips through numpy, and returns a fresh leaf
    tensor (no grad flows to the inputs); this forward-only Pallas kernel matches that.
    """

    def __init__(self):
        super().__init__(loss_fn=kl_divergence_loss_pallas)

    def __call__(self, targets: jax.Array, preds: jax.Array) -> jax.Array:
        return self.loss_fn(targets, preds)


if __name__ == "__main__":
    key = jax.random.PRNGKey(0)
    k_t, k_p = jax.random.split(key)

    # NCHW, small shapes: batch=2, channels=4, spatial=16x16.  Build valid probability
    # distributions per batch element (softmax over C*H*W) so KL is well-defined.
    B, C, H, W = 2, 4, 16, 16
    t_logits = jax.random.normal(k_t, (B, C * H * W), dtype=jnp.float32)
    p_logits = jax.random.normal(k_p, (B, C * H * W), dtype=jnp.float32)
    targets = jax.nn.softmax(t_logits, axis=-1).reshape(B, C, H, W)
    preds = jax.nn.softmax(p_logits, axis=-1).reshape(B, C, H, W)

    loss_mod = KLLoss()
    out = loss_mod(targets, preds)
    out = jax.block_until_ready(out)

    # Reference check against plain-JAX KL divergence.
    ref = jnp.sum(targets * (jnp.log(targets) - jnp.log(preds)))
    assert jnp.allclose(out, ref, rtol=1e-4, atol=1e-6), (out, ref)

    # Also exercise an unaligned / multi-block size to cover the in-kernel tail mask.
    n_odd = 5000  # not a multiple of 1024
    t_odd = jax.nn.softmax(jax.random.normal(k_t, (n_odd,), dtype=jnp.float32))
    p_odd = jax.nn.softmax(jax.random.normal(k_p, (n_odd,), dtype=jnp.float32))
    out_odd = jax.block_until_ready(
        kl_divergence_loss_pallas(t_odd, p_odd, row_tile=16))
    ref_odd = jnp.sum(t_odd * (jnp.log(t_odd) - jnp.log(p_odd)))
    assert jnp.allclose(out_odd, ref_odd, rtol=1e-4, atol=1e-6), (out_odd, ref_odd)

    print("KERNEL_OK")
</pallas_src>

<mosaic_0001>
module attributes {stable_mosaic.version = 11 : i64} {
  func.func @_kl_partial_kernel(%arg0: i32, %arg1: i32, %arg2: memref<16x128xf32, #tpu.memory_space<vmem>>, %arg3: memref<16x128xf32, #tpu.memory_space<vmem>>, %arg4: memref<1x16x128xf32, #tpu.memory_space<vmem>>) attributes {dimension_semantics = [#tpu.dimension_semantics<parallel>, #tpu.dimension_semantics<arbitrary>], iteration_bounds = array<i64: 1, 1>, scalar_prefetch = 0 : i64, scratch_operands = 0 : i64, tpu.core_type = #tpu.core_type<tc>, window_params = [{transform_indices = @transform_0, window_bounds = array<i64: 16, 128>}, {transform_indices = @transform_1, window_bounds = array<i64: 16, 128>}, {transform_indices = @transform_2, window_bounds = array<i64: 1, 16, 128>}]} {
    %c0_i32 = arith.constant 0 : i32
    %0 = arith.cmpi eq, %arg1, %c0_i32 : i32
    %1 = arith.extui %0 : i1 to i32
    %c0_i32_0 = arith.constant 0 : i32
    %2 = arith.cmpi ne, %1, %c0_i32_0 : i32
    scf.if %2 {
      %cst_14 = arith.constant 0.000000e+00 : f32
      %22 = vector.broadcast %cst_14 : f32 to vector<1x16x128xf32>
      %c0_15 = arith.constant 0 : index
      %c0_16 = arith.constant 0 : index
      %c0_17 = arith.constant 0 : index
      %23 = vector.load %arg4[%c0_15, %c0_16, %c0_17] : memref<1x16x128xf32, #tpu.memory_space<vmem>>, vector<1x16x128xf32>
      tpu.vector_store %arg4[%c0_15, %c0_16, %c0_17], %22 {strides = array<i32>} : memref<1x16x128xf32, #tpu.memory_space<vmem>>, vector<1x16x128xf32>,
    } else {
    }
    %c0 = arith.constant 0 : index
    %c0_1 = arith.constant 0 : index
    %3 = vector.load %arg2[%c0, %c0_1] : memref<16x128xf32, #tpu.memory_space<vmem>>, vector<16x128xf32>
    %c0_2 = arith.constant 0 : index
    %c0_3 = arith.constant 0 : index
    %4 = vector.load %arg3[%c0_2, %c0_3] : memref<16x128xf32, #tpu.memory_space<vmem>>, vector<16x128xf32>
    %cst = arith.constant 9.99999935E-39 : f32
    %5 = vector.broadcast %cst : f32 to vector<16x128xf32>
    %6 = arith.maximumf %3, %5 : vector<16x128xf32>
    %cst_4 = arith.constant 9.99999935E-39 : f32
    %7 = vector.broadcast %cst_4 : f32 to vector<16x128xf32>
    %8 = arith.maximumf %4, %7 : vector<16x128xf32>
    %9 = arith.divf %6, %8 : vector<16x128xf32>
    %10 = math.log %9 : vector<16x128xf32>
    %cst_5 = arith.constant 0.000000e+00 : f32
    %11 = vector.broadcast %cst_5 : f32 to vector<16x128xf32>
    %12 = arith.cmpf ogt, %3, %11 : vector<16x128xf32>
    %13 = arith.mulf %3, %10 : vector<16x128xf32>
    %cst_6 = arith.constant 0.000000e+00 : f32
    %14 = vector.broadcast %cst_6 : f32 to vector<16x128xf32>
    %15 = arith.select %12, %13, %14 : vector<16x128xi1>, vector<16x128xf32>
    %16 = vector.shape_cast %15 : vector<16x128xf32> to vector<1x2x8x128xf32>
    %cst_7 = arith.constant dense<0.000000e+00> : vector<2x8x128xf32>
    %17 = vector.multi_reduction <add>, %16, %cst_7 [0] : vector<1x2x8x128xf32> to vector<2x8x128xf32>
    %c0_8 = arith.constant 0 : index
    %c0_9 = arith.constant 0 : index
    %c0_10 = arith.constant 0 : index
    %18 = vector.load %arg4[%c0_8, %c0_9, %c0_10] : memref<1x16x128xf32, #tpu.memory_space<vmem>>, vector<1x16x128xf32>
    %19 = vector.shape_cast %17 : vector<2x8x128xf32> to vector<1x16x128xf32>
    %20 = arith.addf %18, %19 : vector<1x16x128xf32>
    %c0_11 = arith.constant 0 : index
    %c0_12 = arith.constant 0 : index
    %c0_13 = arith.constant 0 : index
    %21 = vector.load %arg4[%c0_11, %c0_12, %c0_13] : memref<1x16x128xf32, #tpu.memory_space<vmem>>, vector<1x16x128xf32>
    tpu.vector_store %arg4[%c0_11, %c0_12, %c0_13], %20 {strides = array<i32>} : memref<1x16x128xf32, #tpu.memory_space<vmem>>, vector<1x16x128xf32>,
    return
  }
  func.func @transform_0(%arg0: i32, %arg1: i32) -> (i32, i32) {
    %c1_i32 = arith.constant 1 : i32
    %0 = arith.muli %arg0, %c1_i32 : i32
    %1 = arith.addi %0, %arg1 : i32
    %c0_i32 = arith.constant 0 : i32
    %c0_i32_0 = arith.constant 0 : i32
    return %1, %c0_i32 : i32, i32
  }
  func.func @transform_1(%arg0: i32, %arg1: i32) -> (i32, i32) {
    %c1_i32 = arith.constant 1 : i32
    %0 = arith.muli %arg0, %c1_i32 : i32
    %1 = arith.addi %0, %arg1 : i32
    %c0_i32 = arith.constant 0 : i32
    %c0_i32_0 = arith.constant 0 : i32
    return %1, %c0_i32 : i32, i32
  }
  func.func @transform_2(%arg0: i32, %arg1: i32) -> (i32, i32, i32) {
    %c0_i32 = arith.constant 0 : i32
    %c0_i32_0 = arith.constant 0 : i32
    %c0_i32_1 = arith.constant 0 : i32
    return %arg0, %c0_i32, %c0_i32_0 : i32, i32, i32
  }
}

</mosaic_0001>

<bundles_post_ra>
// kernel: kl_divergence_loss_pallas.1
= control target key start
LH: loop header
LB: loop body
LE: loop exit
PB: predicated region body
PF: predicated region fallthrough
CT: control target
= control target key end

     0   :  { %s175_s1 = inlined_call_operand.vmem [shape: f32[16,128], index: 1, kind: input, shape index: {}]   ;;  %s176_s0 = inlined_call_operand.vmem [shape: f32[16,128], index: 0, kind: input, shape index: {}]   ;;  %s177_s2 = inlined_call_operand.vmem [shape: f32[1,16,128], index: 2, kind: output, shape index: {}]  }
   0x1   :  { %v63_v0 = vld [vmem:[%s175_s1] sm:$0xff]  ;;  %v64_v2 = vld [vmem:[%s175_s1 + $0x8] sm:$0xff] }
   0x2   :  { %v67_v1 = vmax.f32 %v63_v0, 1e-38  ;;  %v68_v3 = vmax.f32 %v64_v2, 1e-38  ;;  %v61_v12 = vld [vmem:[%s176_s0] sm:$0xff]  ;;  %v62_v16 = vld [vmem:[%s176_s0 + $0x8] sm:$0xff] }
   0x3   :  { %v65_v19 = vmax.f32 %v61_v12, 1e-38  ;;  %v66_v22 = vmax.f32 %v62_v16, 1e-38  ;;  %vm103_vm8 = vcmp.gt.f32.partialorder %v61_v12, 0.0  ;;  %vm104_vm9 = vcmp.gt.f32.partialorder %v62_v16, 0.0 }
   0x4   :  { %134 = vrcp.f32 %v67_v1  ;;  %vm74_vm0 = vweird.f32 %v67_v1  ;;  %v80_v7 = vand.u32 2147483648, %v67_v1  ;;  %v78_v10 = vand.u32 2147483647, %v67_v1 }
   0x5   :  { %136 = vrcp.f32 %v68_v3  ;;  %v95_v11 = vand.u32 2147483648, %v68_v3  ;;  %vm89_vm2 = vweird.f32 %v68_v3  ;;  %v93_v14 = vand.u32 2147483647, %v68_v3 }
   0x6   :  { %v81_v17 = vor.u32 1.1754944e-38, %v80_v7  ;;  %vm79_vm5 = vcmp.eq.f32.partialorder %v78_v10, 8.507059e+37 }
   0x7   :  { %v96_v21 = vor.u32 1.1754944e-38, %v95_v11  ;;  %vm94_vm7 = vcmp.eq.f32.partialorder %v93_v14, 8.507059e+37 }
   0xa   :  { %v135_v4 = vpop.eup %134 }
   0xb   :  { %v137_v5 = vpop.eup %136  ;;  %v70_v6 = vmul.f32 %v135_v4, %v67_v1  ;;  %vm75_vm1 = vweird.f32 %v135_v4 }
   0xc   :  { %v85_v8 = vmul.f32 %v137_v5, %v68_v3  ;;  %vm90_vm3 = vweird.f32 %v137_v5  ;;  %vm76_vm4 = vmor %vm74_vm0, %vm75_vm1 }
   0xd   :  { %v71_v9 = vsub.f32 1.0, %v70_v6  ;;  %vm91_vm6 = vmor %vm89_vm2, %vm90_vm3 }
   0xe   :  { %v86_v13 = vsub.f32 1.0, %v85_v8 }
   0xf   :  { %v72_v15 = vmul.f32 %v135_v4, %v71_v9 }
  0x10   :  { %v87_v18 = vmul.f32 %v137_v5, %v86_v13 }
  0x11   :  { %v73_v20 = vadd.f32 %v135_v4, %v72_v15 }
  0x12   :  { %v88_v23 = vadd.f32 %v137_v5, %v87_v18 }
  0x13   :  { %v77_v24 = vsel %vm76_vm4, %v135_v4, %v73_v20 }
  0x14   :  { %v82_v25 = vsel %vm79_vm5, %v81_v17, %v77_v24  ;;  %v92_v26 = vsel %vm91_vm6, %v137_v5, %v88_v23 }
  0x15   :  { %v83_v27 = vmul.f32 %v82_v25, %v65_v19  ;;  %v97_v28 = vsel %vm94_vm7, %v96_v21, %v92_v26 }
  0x16   :  { %v98_v29 = vmul.f32 %v97_v28, %v66_v22 }
  0x17   :  { %138 = vlog2.f32 %v83_v27 }
  0x18   :  { %140 = vlog2.f32 %v98_v29 }
  0x1d   :  { %v139_v30 = vpop.eup %138 }
  0x1e   :  { %v141_v31 = vpop.eup %140  ;;  %v100_v32 = vmul.f32 0.6931472, %v139_v30 }
  0x1f   :  { %v102_v33 = vmul.f32 0.6931472, %v141_v31 }
  0x20   :  { %v105_v34 = vmul.f32 %v100_v32, %v61_v12 }
  0x21   :  { %v106_v35 = vmul.f32 %v102_v33, %v62_v16 }
  0x22   :  { %v107_v36 = vsel %vm103_vm8, %v105_v34, 0.0 }
  0x23   :  { %v108_v37 = vsel %vm104_vm9, %v106_v35, 0.0  ;;  %115 = vst [vmem:[%s177_s2] sm:$0xff] %v107_v36 }
  0x24   :  { %116 = vst [vmem:[%s177_s2 + $0x8] sm:$0xff] %v108_v37 }

</bundles_post_ra>
